<compile_context>
chip_gen: v7x
topology: tpu7x:2x2x1
jax: 0.10.0
libtpu: 0.0.40
codegen_flags: <defaults>
</compile_context>

<pallas_src>
import functools

import jax
import jax.numpy as jnp
from jax.experimental import pallas as pl
from jax.experimental.pallas import tpu as pltpu


def _attn_regressor_kernel(x_ref, w1_ref, b1_ref, a_ref, w2_ref, b2_ref,
                           w3_ref, b3_ref, o_ref):
    # x_ref : [tb, S, D]      w1_ref: [D, H]   b1_ref: [1, H]   a_ref: [1, H]
    # w2_ref: [H, F2]         b2_ref: [1, F2]  w3_ref: [1, F2]  b3_ref: [1, 1]
    # o_ref : [tb, 1]
    tb, S, D = x_ref.shape
    H = w1_ref.shape[1]

    x = x_ref[...].astype(jnp.float32).reshape(tb * S, D)

    # ---- fc1 + ReLU (MXU matmul, f32 accumulation) ----
    # TODO(synk): nn.Dropout is identity at inference; training-mode dropout RNG not implemented.
    h = jnp.dot(x, w1_ref[...].astype(jnp.float32),
                preferred_element_type=jnp.float32) + b1_ref[...]
    h = jnp.maximum(h, 0.0)                              # [tb*S, H]
    h3 = h.reshape(tb, S, H)                             # [tb, S, H]

    # ---- attention scores: Linear(H, 1, bias=False) over each (b, s) ----
    a3 = a_ref[...].astype(jnp.float32).reshape(1, 1, H)
    scores = jnp.sum(h3 * a3, axis=2, keepdims=True)     # [tb, S, 1]

    # ---- softmax over the sequence axis (axis=1) ----
    m = jnp.max(scores, axis=1, keepdims=True)           # [tb, 1, 1]
    p = jnp.exp(scores - m)
    p = p / jnp.sum(p, axis=1, keepdims=True)            # [tb, S, 1]

    # ---- context = sum_s p[b, s] * h[b, s, :] ----
    context = jnp.sum(p * h3, axis=1)                    # [tb, H]

    # ---- fc2 + ReLU ----
    y2 = jnp.dot(context, w2_ref[...].astype(jnp.float32),
                 preferred_element_type=jnp.float32) + b2_ref[...]
    y2 = jnp.maximum(y2, 0.0)                            # [tb, F2]

    # ---- fc3 (weight passed as [1, F2] so the contraction is a lane reduce) ----
    y = jnp.sum(y2 * w3_ref[...].astype(jnp.float32), axis=-1, keepdims=True)
    y = y + b3_ref[...]                                  # [tb, 1]
    o_ref[...] = y.astype(o_ref.dtype)


def attention_regressor(x, w1, b1, a, w2, b2, w3, b3, *, tile_b=128):
    """x: [B, S, D].  Weights are stored transposed vs. torch ((in, out) layout);
    a / w3 are the Linear(H,1) / Linear(64,1) weights laid out as [1, H] / [1, 64].
    Returns [B] (matching `out.squeeze(1)` of the PyTorch module)."""
    B, S, D = x.shape
    H = w1.shape[1]
    F2 = w2.shape[1]

    tb = min(tile_b, B)
    if B % tb != 0:
        tb = B  # fall back to a single batch tile for ragged B

    flops = (2 * B * S * D * H          # fc1
             + 4 * B * S * H            # scores + context
             + 2 * B * H * F2           # fc2
             + 2 * B * F2)              # fc3
    bytes_accessed = 4 * (x.size + w1.size + b1.size + a.size + w2.size
                          + b2.size + w3.size + b3.size + B)

    out = pl.pallas_call(
        _attn_regressor_kernel,
        out_shape=jax.ShapeDtypeStruct((B, 1), x.dtype),
        grid_spec=pltpu.PrefetchScalarGridSpec(
            num_scalar_prefetch=0,
            grid=(B // tb,),
            in_specs=[
                pl.BlockSpec((tb, S, D), lambda i: (i, 0, 0)),   # x
                pl.BlockSpec((D, H), lambda i: (0, 0)),          # fc1 weight
                pl.BlockSpec((1, H), lambda i: (0, 0)),          # fc1 bias
                pl.BlockSpec((1, H), lambda i: (0, 0)),          # attention weight
                pl.BlockSpec((H, F2), lambda i: (0, 0)),         # fc2 weight
                pl.BlockSpec((1, F2), lambda i: (0, 0)),         # fc2 bias
                pl.BlockSpec((1, F2), lambda i: (0, 0)),         # fc3 weight (as row)
                pl.BlockSpec((1, 1), lambda i: (0, 0)),          # fc3 bias
            ],
            out_specs=pl.BlockSpec((tb, 1), lambda i: (i, 0)),
        ),
        compiler_params=pltpu.CompilerParams(
            dimension_semantics=("parallel",)),
        cost_estimate=pl.CostEstimate(flops=flops,
                                      transcendentals=B * S,
                                      bytes_accessed=bytes_accessed),
    )(x, w1, b1, a, w2, b2, w3, b3)

    return out[:, 0]


def _reference(x, w1, b1, a, w2, b2, w3, b3):
    """Pure-JAX mirror of the PyTorch forward, for correctness checking."""
    h = jax.nn.relu(jnp.einsum('bsd,dh->bsh', x, w1) + b1)      # [B, S, H]
    scores = jnp.einsum('bsh,h->bs', h, a[0])                   # [B, S]
    p = jax.nn.softmax(scores, axis=-1)                         # softmax over seq
    context = jnp.einsum('bs,bsh->bh', p, h)                    # [B, H]
    y2 = jax.nn.relu(context @ w2 + b2)                         # [B, 64]
    y = jnp.sum(y2 * w3, axis=-1) + b3[0, 0]                    # [B]
    return y


if __name__ == "__main__":
    # Small shapes consistent with the module: batch=2, seq=8, input_size=32,
    # hidden_size=32, fc2 -> 64, fc3 -> 1.
    B, S, D, H, F2 = 2, 8, 32, 32, 64

    key = jax.random.PRNGKey(0)
    keys = jax.random.split(key, 8)
    x  = jax.random.normal(keys[0], (B, S, D), dtype=jnp.float32)
    w1 = jax.random.normal(keys[1], (D, H), dtype=jnp.float32) * 0.1
    b1 = jax.random.normal(keys[2], (1, H), dtype=jnp.float32) * 0.1
    a  = jax.random.normal(keys[3], (1, H), dtype=jnp.float32) * 0.1
    w2 = jax.random.normal(keys[4], (H, F2), dtype=jnp.float32) * 0.1
    b2 = jax.random.normal(keys[5], (1, F2), dtype=jnp.float32) * 0.1
    w3 = jax.random.normal(keys[6], (1, F2), dtype=jnp.float32) * 0.1
    b3 = jax.random.normal(keys[7], (1, 1), dtype=jnp.float32) * 0.1

    out = attention_regressor(x, w1, b1, a, w2, b2, w3, b3)
    out = jax.block_until_ready(out)

    ref = _reference(x, w1, b1, a, w2, b2, w3, b3)
    assert out.shape == (B,), out.shape
    assert jnp.allclose(out, ref, atol=1e-5, rtol=1e-5), float(
        jnp.max(jnp.abs(out - ref)))

    print("KERNEL_OK")
</pallas_src>

<mosaic_0001>
module attributes {stable_mosaic.version = 11 : i64} {
  func.func @_attn_regressor_kernel(%arg0: i32, %arg1: memref<2x8x32xf32, #tpu.memory_space<vmem>>, %arg2: memref<32x32xf32, #tpu.memory_space<vmem>>, %arg3: memref<1x32xf32, #tpu.memory_space<vmem>>, %arg4: memref<1x32xf32, #tpu.memory_space<vmem>>, %arg5: memref<32x64xf32, #tpu.memory_space<vmem>>, %arg6: memref<1x64xf32, #tpu.memory_space<vmem>>, %arg7: memref<1x64xf32, #tpu.memory_space<vmem>>, %arg8: memref<1x1xf32, #tpu.memory_space<vmem>>, %arg9: memref<2x1xf32, #tpu.memory_space<vmem>>) attributes {dimension_semantics = [#tpu.dimension_semantics<parallel>], iteration_bounds = array<i64: 1>, scalar_prefetch = 0 : i64, scratch_operands = 0 : i64, tpu.core_type = #tpu.core_type<tc>, window_params = [{transform_indices = @transform_0, window_bounds = array<i64: 2, 8, 32>}, {pipeline_mode = #tpu.pipeline_mode<synchronous>, transform_indices = @transform_1, window_bounds = array<i64: 32, 32>}, {pipeline_mode = #tpu.pipeline_mode<synchronous>, transform_indices = @transform_2, window_bounds = array<i64: 1, 32>}, {pipeline_mode = #tpu.pipeline_mode<synchronous>, transform_indices = @transform_3, window_bounds = array<i64: 1, 32>}, {pipeline_mode = #tpu.pipeline_mode<synchronous>, transform_indices = @transform_4, window_bounds = array<i64: 32, 64>}, {pipeline_mode = #tpu.pipeline_mode<synchronous>, transform_indices = @transform_5, window_bounds = array<i64: 1, 64>}, {pipeline_mode = #tpu.pipeline_mode<synchronous>, transform_indices = @transform_6, window_bounds = array<i64: 1, 64>}, {pipeline_mode = #tpu.pipeline_mode<synchronous>, transform_indices = @transform_7, window_bounds = array<i64: 1, 1>}, {transform_indices = @transform_8, window_bounds = array<i64: 2, 1>}]} {
    %c0 = arith.constant 0 : index
    %c0_0 = arith.constant 0 : index
    %c0_1 = arith.constant 0 : index
    %0 = vector.load %arg1[%c0, %c0_0, %c0_1] : memref<2x8x32xf32, #tpu.memory_space<vmem>>, vector<2x8x32xf32>
    %1 = vector.shape_cast %0 : vector<2x8x32xf32> to vector<16x32xf32>
    %c0_2 = arith.constant 0 : index
    %c0_3 = arith.constant 0 : index
    %2 = vector.load %arg2[%c0_2, %c0_3] : memref<32x32xf32, #tpu.memory_space<vmem>>, vector<32x32xf32>
    %cst = arith.constant dense<0.000000e+00> : vector<16x32xf32>
    %3 = tpu.matmul %1, %2, %cst {dimension_numbers = #tpu.dot_dimension_numbers<[1], [0], [0], [1], [0, 0, 1, 1], [], []>} : vector<16x32xf32>, vector<32x32xf32>, vector<16x32xf32> -> vector<16x32xf32>
    %c0_4 = arith.constant 0 : index
    %c0_5 = arith.constant 0 : index
    %4 = vector.load %arg3[%c0_4, %c0_5] : memref<1x32xf32, #tpu.memory_space<vmem>>, vector<1x32xf32>
    %5 = vector.broadcast %4 : vector<1x32xf32> to vector<16x32xf32>
    %6 = arith.addf %3, %5 : vector<16x32xf32>
    %cst_6 = arith.constant 0.000000e+00 : f32
    %7 = vector.broadcast %cst_6 : f32 to vector<16x32xf32>
    %8 = arith.maximumf %6, %7 : vector<16x32xf32>
    %9 = vector.shape_cast %8 : vector<16x32xf32> to vector<2x8x32xf32>
    %c0_7 = arith.constant 0 : index
    %c0_8 = arith.constant 0 : index
    %10 = vector.load %arg4[%c0_7, %c0_8] : memref<1x32xf32, #tpu.memory_space<vmem>>, vector<1x32xf32>
    %11 = vector.shape_cast %10 : vector<1x32xf32> to vector<1x1x32xf32>
    %12 = vector.broadcast %11 : vector<1x1x32xf32> to vector<2x8x32xf32>
    %13 = arith.mulf %9, %12 : vector<2x8x32xf32>
    %cst_9 = arith.constant dense<0.000000e+00> : vector<2x8xf32>
    %14 = vector.multi_reduction <add>, %13, %cst_9 [2] : vector<2x8x32xf32> to vector<2x8xf32>
    %15 = vector.shape_cast %14 : vector<2x8xf32> to vector<2x8x1xf32>
    %cst_10 = arith.constant dense<0xFF800000> : vector<2x1xf32>
    %16 = vector.multi_reduction <maximumf>, %15, %cst_10 [1] : vector<2x8x1xf32> to vector<2x1xf32>
    %17 = vector.shape_cast %16 : vector<2x1xf32> to vector<2x1x1xf32>
    %18 = vector.broadcast %17 : vector<2x1x1xf32> to vector<2x8x1xf32>
    %19 = arith.subf %15, %18 : vector<2x8x1xf32>
    %20 = math.exp %19 : vector<2x8x1xf32>
    %cst_11 = arith.constant dense<0.000000e+00> : vector<2x1xf32>
    %21 = vector.multi_reduction <add>, %20, %cst_11 [1] : vector<2x8x1xf32> to vector<2x1xf32>
    %22 = vector.shape_cast %21 : vector<2x1xf32> to vector<2x1x1xf32>
    %23 = vector.broadcast %22 : vector<2x1x1xf32> to vector<2x8x1xf32>
    %24 = arith.divf %20, %23 : vector<2x8x1xf32>
    %25 = vector.broadcast %24 : vector<2x8x1xf32> to vector<2x8x32xf32>
    %26 = arith.mulf %25, %9 : vector<2x8x32xf32>
    %cst_12 = arith.constant dense<0.000000e+00> : vector<2x32xf32>
    %27 = vector.multi_reduction <add>, %26, %cst_12 [1] : vector<2x8x32xf32> to vector<2x32xf32>
    %c0_13 = arith.constant 0 : index
    %c0_14 = arith.constant 0 : index
    %28 = vector.load %arg5[%c0_13, %c0_14] : memref<32x64xf32, #tpu.memory_space<vmem>>, vector<32x64xf32>
    %cst_15 = arith.constant dense<0.000000e+00> : vector<2x64xf32>
    %29 = tpu.matmul %27, %28, %cst_15 {dimension_numbers = #tpu.dot_dimension_numbers<[1], [0], [0], [1], [0, 0, 1, 1], [], []>} : vector<2x32xf32>, vector<32x64xf32>, vector<2x64xf32> -> vector<2x64xf32>
    %c0_16 = arith.constant 0 : index
    %c0_17 = arith.constant 0 : index
    %30 = vector.load %arg6[%c0_16, %c0_17] : memref<1x64xf32, #tpu.memory_space<vmem>>, vector<1x64xf32>
    %31 = vector.broadcast %30 : vector<1x64xf32> to vector<2x64xf32>
    %32 = arith.addf %29, %31 : vector<2x64xf32>
    %cst_18 = arith.constant 0.000000e+00 : f32
    %33 = vector.broadcast %cst_18 : f32 to vector<2x64xf32>
    %34 = arith.maximumf %32, %33 : vector<2x64xf32>
    %c0_19 = arith.constant 0 : index
    %c0_20 = arith.constant 0 : index
    %35 = vector.load %arg7[%c0_19, %c0_20] : memref<1x64xf32, #tpu.memory_space<vmem>>, vector<1x64xf32>
    %36 = vector.broadcast %35 : vector<1x64xf32> to vector<2x64xf32>
    %37 = arith.mulf %34, %36 : vector<2x64xf32>
    %cst_21 = arith.constant dense<0.000000e+00> : vector<2xf32>
    %38 = vector.multi_reduction <add>, %37, %cst_21 [1] : vector<2x64xf32> to vector<2xf32>
    %39 = vector.shape_cast %38 : vector<2xf32> to vector<2x1xf32>
    %c0_22 = arith.constant 0 : index
    %c0_23 = arith.constant 0 : index
    %40 = vector.load %arg8[%c0_22, %c0_23] : memref<1x1xf32, #tpu.memory_space<vmem>>, vector<1x1xf32>
    %41 = vector.broadcast %40 : vector<1x1xf32> to vector<2x1xf32>
    %42 = arith.addf %39, %41 : vector<2x1xf32>
    %c0_24 = arith.constant 0 : index
    %c0_25 = arith.constant 0 : index
    %43 = vector.load %arg9[%c0_24, %c0_25] : memref<2x1xf32, #tpu.memory_space<vmem>>, vector<2x1xf32>
    tpu.vector_store %arg9[%c0_24, %c0_25], %42 {strides = array<i32>} : memref<2x1xf32, #tpu.memory_space<vmem>>, vector<2x1xf32>,
    return
  }
  func.func @transform_0(%arg0: i32) -> (i32, i32, i32) {
    %c0_i32 = arith.constant 0 : i32
    %c0_i32_0 = arith.constant 0 : i32
    %c0_i32_1 = arith.constant 0 : i32
    return %arg0, %c0_i32, %c0_i32_0 : i32, i32, i32
  }
  func.func @transform_1(%arg0: i32) -> (i32, i32) {
    %c0_i32 = arith.constant 0 : i32
    %c0_i32_0 = arith.constant 0 : i32
    %c0_i32_1 = arith.constant 0 : i32
    return %c0_i32, %c0_i32_0 : i32, i32
  }
  func.func @transform_2(%arg0: i32) -> (i32, i32) {
    %c0_i32 = arith.constant 0 : i32
    %c0_i32_0 = arith.constant 0 : i32
    %c0_i32_1 = arith.constant 0 : i32
    return %c0_i32, %c0_i32_0 : i32, i32
  }
  func.func @transform_3(%arg0: i32) -> (i32, i32) {
    %c0_i32 = arith.constant 0 : i32
    %c0_i32_0 = arith.constant 0 : i32
    %c0_i32_1 = arith.constant 0 : i32
    return %c0_i32, %c0_i32_0 : i32, i32
  }
  func.func @transform_4(%arg0: i32) -> (i32, i32) {
    %c0_i32 = arith.constant 0 : i32
    %c0_i32_0 = arith.constant 0 : i32
    %c0_i32_1 = arith.constant 0 : i32
    return %c0_i32, %c0_i32_0 : i32, i32
  }
  func.func @transform_5(%arg0: i32) -> (i32, i32) {
    %c0_i32 = arith.constant 0 : i32
    %c0_i32_0 = arith.constant 0 : i32
    %c0_i32_1 = arith.constant 0 : i32
    return %c0_i32, %c0_i32_0 : i32, i32
  }
  func.func @transform_6(%arg0: i32) -> (i32, i32) {
    %c0_i32 = arith.constant 0 : i32
    %c0_i32_0 = arith.constant 0 : i32
    %c0_i32_1 = arith.constant 0 : i32
    return %c0_i32, %c0_i32_0 : i32, i32
  }
  func.func @transform_7(%arg0: i32) -> (i32, i32) {
    %c0_i32 = arith.constant 0 : i32
    %c0_i32_0 = arith.constant 0 : i32
    %c0_i32_1 = arith.constant 0 : i32
    return %c0_i32, %c0_i32_0 : i32, i32
  }
  func.func @transform_8(%arg0: i32) -> (i32, i32) {
    %c0_i32 = arith.constant 0 : i32
    %c0_i32_0 = arith.constant 0 : i32
    return %arg0, %c0_i32 : i32, i32
  }
}

</mosaic_0001>

<bundles_post_ra>
// kernel: tpu_custom_call.1
= control target key start
LH: loop header
LB: loop body
LE: loop exit
PB: predicated region body
PF: predicated region fallthrough
CT: control target
= control target key end

     0   :  { %s631_s0 = inlined_call_operand.hbm [shape: f32[2,8,32], index: 0, kind: input, shape index: {}]   ;;  %s632_s1 = inlined_call_operand.hbm [shape: f32[32,32], index: 1, kind: input, shape index: {}]   ;;  %s633_s2 = inlined_call_operand.vmem [shape: f32[1,32], index: 2, kind: input, shape index: {}]   ;;  %s634_s3 = inlined_call_operand.vmem [shape: f32[1,32], index: 3, kind: input, shape index: {}]   ;;  %s635_s4 = inlined_call_operand.hbm [shape: f32[32,64], index: 4, kind: input, shape index: {}]   ;;  %s636_s5 = inlined_call_operand.vmem [shape: f32[1,64], index: 5, kind: input, shape index: {}]   ;;  %s637_s6 = inlined_call_operand.vmem [shape: f32[1,64], index: 6, kind: input, shape index: {}]   ;;  %s638_s7 = inlined_call_operand.<no memory space> [shape: f32[1,1], index: 7, kind: input, shape index: {}]   ;;  %s639_s8 = inlined_call_operand.vmem [shape: f32[2,1], index: 8, kind: output, shape index: {}]  }
   0x1   :  { %v13_v0 = vstv %s638_s7 }
   0x2   :  { %14 = vst [vmem:[#allocation2] sm:$0x1] %v13_v0 }
   0x3   :  { %15 = vsyncpa [#allocation4], 0 }
   0x4   :  { %16 = vsyncpa [#allocation6], 0  ;;  %s491_s29 = smov [#allocation5]   ;;  %s492_s9 = smov [#allocation3]  }
   0x5   :  { %s34_s30 = sshll.u32 %s491_s29, 4  ;;  %s22_s10 = sshll.u32 %s492_s9, 4  ;;  %s35_s30 = int_to_ptr.vmem [resolvable:$true] %s34_s30  ;;  %s547_s10 = int_to_ptr.vmem [resolvable:$true] %s22_s10 }
   0x6   :  { %s421_s13 = scalar_lea.hbm %s632_s1, 512 }
   0x7   :  { %p422_p0 = scmp.ne.s32.totalorder %s632_s1, %s421_s13  ;;  %p425_p1 = scmp.lt.u32.totalorder %s421_s13, %s632_s1 }
   0x9   :  { %p427_p2 = pnand %p425_p1, %p422_p0 }
   0xb   :  { %430 = shalt.err (!%p427_p2)
}
   0xc   :  { %s431_s17 = scalar_lea.vmem %s35_s30, 512  ;;  %p436_p4 = scmp.lt.s32.totalorder %s35_s30, %s35_s30 }
   0xd   :  { %p432_p3 = scmp.ne.s32.totalorder %s35_s30, %s431_s17  ;;  %p437_p5 = scmp.lt.s32.totalorder %s431_s17, %s431_s17 }
   0xf   :  { %p438_p6 = por %p437_p5, %p436_p4 }
  0x11   :  { %p439_p7 = pnand %p438_p6, %p432_p3 }
  0x13   :  { %442 = shalt.err (!%p439_p7)
}
  0x14   :  { %s493_s18 = smov 128   ;;  %s494_s19 = smov 8  }
  0x15   :  { %40 = dma.hbm_to_vmem [thread:$0]  %s632_s1, 512, %s35_s30, [#allocation6], %s493_s18, %s493_s18, %s494_s19  }
  0x16   :  { %s443_s24 = scalar_lea.hbm %s631_s0, 256 }
  0x17   :  { %p444_p8 = scmp.ne.s32.totalorder %s631_s0, %s443_s24  ;;  %p447_p9 = scmp.lt.u32.totalorder %s443_s24, %s631_s0 }
  0x19   :  { %p449_p10 = pnand %p447_p9, %p444_p8 }
  0x1b   :  { %452 = shalt.err (!%p449_p10)
}
  0x1c   :  { %s453_s29 = scalar_lea.vmem %s547_s10, 256  ;;  %p458_p12 = scmp.lt.s32.totalorder %s547_s10, %s547_s10 }
  0x1d   :  { %p454_p11 = scmp.ne.s32.totalorder %s547_s10, %s453_s29  ;;  %p459_p13 = scmp.lt.s32.totalorder %s453_s29, %s453_s29 }
  0x1f   :  { %p460_p0 = por %p459_p13, %p458_p12 }
  0x21   :  { %p461_p1 = pnand %p460_p0, %p454_p11 }
  0x23   :  { %464 = shalt.err (!%p461_p1)
}
  0x24   :  { %28 = dma.hbm_to_vmem [thread:$0]  %s631_s0, 256, %s547_s10, [#allocation4], %s493_s18, %s493_s18, %s494_s19  }
  0x25   :  { %s495_s9 = smov [#allocation7]   ;;  %s465_s14 = scalar_lea.hbm %s635_s4, 512 }
  0x26   :  { %s50_s11 = sshll.u32 %s495_s9, 4  ;;  %p466_p2 = scmp.ne.s32.totalorder %s635_s4, %s465_s14  ;;  %s51_s11 = int_to_ptr.vmem [resolvable:$true] %s50_s11 }
  0x27   :  { %p469_p3 = scmp.lt.u32.totalorder %s465_s14, %s635_s4 }
  0x29   :  { %p471_p4 = pnand %p469_p3, %p466_p2 }
  0x2b   :  { %474 = shalt.err (!%p471_p4)
}
  0x2c   :  { %s475_s20 = scalar_lea.vmem %s51_s11, 512  ;;  %p480_p6 = scmp.lt.s32.totalorder %s51_s11, %s51_s11 }
  0x2d   :  { %p476_p5 = scmp.ne.s32.totalorder %s51_s11, %s475_s20  ;;  %p481_p7 = scmp.lt.s32.totalorder %s475_s20, %s475_s20 }
  0x2f   :  { %p482_p8 = por %p481_p7, %p480_p6 }
  0x31   :  { %p483_p9 = pnand %p482_p8, %p476_p5 }
  0x33   :  { %486 = shalt.err (!%p483_p9)
}
  0x34   :  { %56 = dma.hbm_to_vmem [thread:$0]  %s635_s4, 512, %s51_s11, [#allocation6], %s493_s18, %s493_s18, %s494_s19  }
  0x35   :  { %487 = dma.done.wait [#allocation4], 256  }
  0x36   :  { %488 = vsyncadd [#allocation4], 4294967040 }
  0x37   :  { %489 = dma.done.wait [#allocation6], 1024  }
  0x38   :  { %490 = vsyncadd [#allocation6], 4294966272  ;;  %vm85_vm0 = vcmask 261120   ;;  %v74_v1 = vld [vmem:[#allocation5] sm:$0xff]  ;;  %v75_v2 = vld [vmem:[#allocation5 + $0x8] sm:$0xff]  ;;  %v496_v24 = vmov 0.0|0.0  }
  0x39   :  { %v76_v3 = vld [vmem:[#allocation5 + $0x10] sm:$0xff]  ;;  %v391_v4 = vpack.c.bf16 %v75_v2, %v74_v1  ;;  %v77_v5 = vld [vmem:[#allocation5 + $0x18] sm:$0xff]  ;;  %v350_v9 = vld [vmem:[%s633_s2] ss:$0 sm:$0xff]  ;;  %399 = vmatprep.subr.bf16.mxu1 %v496_v24  ;;  %vm497_vm1 = vmmov 0   ;;  %v498_v27 = vmov 0.0  }
  0x3a   :  { %v72_v6 = vld [vmem:[#allocation3] sm:$0xff]  ;;  %v395_v7 = vpack.c.bf16 %v77_v5, %v76_v3  ;;  %v73_v8 = vld [vmem:[#allocation3 + $0x8] sm:$0xff]  ;;  %v353_v14 = vld [vmem:[%s634_s3] ss:$0 sm:$0xff]  ;;  %388 = vmatprep.mubr.msk.f32.mxu1 %vm497_vm1, %v498_v27  ;;  %vm247_vm2 = vcmask 1041409   ;;  %vm330_vm3 = vcmask 517120  }
  0x3b   :  { %377 = vmatprep.mubr.msk.f32.mxu0 %vm85_vm0, %v72_v6  ;;  %392 = vmatprep.subr.bf16.mxu0 %v391_v4  ;;  %v234_v21 = vld [vmem:[#allocation7] sm:$0xff]  ;;  %v235_v22 = vld [vmem:[#allocation7 + $0x8] sm:$0xff]  ;;  %v236_v23 = vld [vmem:[#allocation7 + $0x10] sm:$0xff]  ;;  %vm342_vm4 = vcmask 1024  }
  0x3c   :  { %394 = vmatpush3.bf16.msra.mxu0 %v391_v4  ;;  %v400_v25 = vpack.c.bf16 %v235_v22, %v234_v21  ;;  %v237_v26 = vld [vmem:[#allocation7 + $0x18] sm:$0xff]  ;;  %v356_v22 = vld [vmem:[%s637_s6] ss:$0 sm:$0xff] }
  0x3d   :  { %396 = vmatprep.subr.bf16.mxu0 %v395_v7  ;;  %v403_v28 = vpack.c.bf16 %v237_v26, %v236_v23  ;;  %v357_v26 = vld [vmem:[#allocation2] ss:$0 sm:$0xff] }
  0x3e   :  { %401 = vmatpush3.bf16.msra.mxu1 %v400_v25 }
  0x3f   :  { %402 = vmatprep.subr.bf16.mxu1 %v496_v24 }
  0x40   :  { %398 = vmatpush3.bf16.msra.mxu0 %v395_v7 }
  0x42   :  { %404 = vmatpush3.bf16.msra.mxu1 %v403_v28 }
  0x43   :  { %378 = vmatmul.mubr.msk.f32.vlgmr.msra.gmra.mrb[0].mxu0 %vm85_vm0, %v73_v8 }
 0x116   :  { %v379_v10 = vpop.f32.mrb[0].mxu0 }
 0x117   :  { %v604_v11 = vadd.f32 %v379_v10, %v350_v9  ;;  %v158_v12 = vpop.f32.mrb[1].mxu0 }
 0x118   :  { %v606_v13 = vadd.f32 %v350_v9, %v158_v12 }
 0x119   :  { %v168_v15 = vmax.f32 %v604_v11, 0.0  ;;  %v354_v11 = vld [vmem:[%s636_s5] ss:$0 sm:$0xff] }
 0x11a   :  { %v167_v16 = vmax.f32 %v606_v13, 0.0 }
 0x11b   :  { %v177_v19 = vmul.f32 %v353_v14, %v168_v15 }
 0x11c   :  { %v176_v17 = vmul.f32 %v353_v14, %v167_v16 }
 0x11d   :  { %v181_v20 = vsel %vm85_vm0, %v177_v19, 0.0 }
 0x11e   :  { %v178_v18 = vsel %vm85_vm0, %v176_v17, 0.0 }
 0x11f   :  { %179 = vadd.xlane.f32.xlu0 %v178_v18 }
 0x123   :  { %182 = vadd.xlane.f32.xlu0 %v181_v20 }
 0x1ac   :  { %v180_v29 = vpop.xlane.xlu0 %179 }
 0x1ad   :  { %v184_v30 = vrot.slane %v180_v29, 4 }
 0x1af   :  { %v185_v31 = vmax.f32 %v180_v29, %v184_v30 }
 0x1b0   :  { %v183_v32 = vpop.xlane.xlu0 %182 }
 0x1b1   :  { %v186_v33 = vrot.slane %v185_v31, 2  ;;  %v190_v34 = vrot.slane %v183_v32, 4 }
 0x1b3   :  { %v187_v35 = vmax.f32 %v185_v31, %v186_v33  ;;  %v191_v36 = vmax.f32 %v183_v32, %v190_v34 }
 0x1b5   :  { %v188_v37 = vrot.slane %v187_v35, 1  ;;  %v192_v38 = vrot.slane %v191_v36, 2 }
 0x1b7   :  { %v189_v39 = vmax.f32 %v187_v35, %v188_v37  ;;  %v193_v40 = vmax.f32 %v191_v36, %v192_v38 }
 0x1b9   :  { %v196_v41 = vsub.f32 %v180_v29, %v189_v39  ;;  %v194_v42 = vrot.slane %v193_v40, 1 }
 0x1bb   :  { %v198_v43 = vmul.f32 1.442695, %v196_v41  ;;  %v195_v44 = vmax.f32 %v193_v40, %v194_v42 }
 0x1bd   :  { %413 = vpow2.f32 %v198_v43  ;;  %v197_v45 = vsub.f32 %v183_v32, %v195_v44 }
 0x1bf   :  { %v200_v46 = vmul.f32 1.442695, %v197_v45 }
 0x1c1   :  { %415 = vpow2.f32 %v200_v46 }
 0x1c7   :  { %v414_v47 = vpop.eup %413 }
 0x1c8   :  { %v202_v48 = vrot.slane %v414_v47, 4 }
 0x1ca   :  { %v203_v49 = vadd.f32 %v414_v47, %v202_v48 }
 0x1cb   :  { %v416_v50 = vpop.eup %415 }
 0x1cc   :  { %v204_v51 = vrot.slane %v203_v49, 2  ;;  %v208_v52 = vrot.slane %v416_v50, 4 }
 0x1ce   :  { %v209_v53 = vadd.f32 %v416_v50, %v208_v52  ;;  %v205_v54 = vadd.f32 %v204_v51, %v203_v49 }
 0x1d0   :  { %v210_v55 = vrot.slane %v209_v53, 2  ;;  %v206_v56 = vrot.slane %v205_v54, 1 }
 0x1d2   :  { %v211_v57 = vadd.f32 %v210_v55, %v209_v53  ;;  %v207_v58 = vadd.f32 %v206_v56, %v205_v54 }
 0x1d4   :  { %v212_v59 = vrot.slane %v211_v57, 1  ;;  %417 = vrcp.f32 %v207_v58 }
 0x1d6   :  { %v213_v60 = vadd.f32 %v212_v59, %v211_v57 }
 0x1d8   :  { %419 = vrcp.f32 %v213_v60 }
 0x1de   :  { %v418_v61 = vpop.eup %417 }
 0x1df   :  { %v215_v62 = vmul.f32 %v418_v61, %v414_v47 }
 0x1e1   :  { %v218_v63 = vmul.f32 %v215_v62, %v167_v16 }
 0x1e2   :  { %v420_v0 = vpop.eup %419 }
 0x1e3   :  { %v217_v1 = vmul.f32 %v420_v0, %v416_v50  ;;  %v220_v2 = vsel %vm85_vm0, %v218_v63, 0.0 }
 0x1e4   :  { %v221_v3 = vrot.slane %v220_v2, 4 }
 0x1e5   :  { %v219_v4 = vmul.f32 %v217_v1, %v168_v15 }
 0x1e6   :  { %v222_v5 = vadd.f32 %v221_v3, %v220_v2 }
 0x1e7   :  { %v227_v6 = vsel %vm85_vm0, %v219_v4, 0.0 }
 0x1e8   :  { %v223_v7 = vrot.slane %v222_v5, 2  ;;  %v228_v8 = vrot.slane %v227_v6, 4 }
 0x1ea   :  { %v224_v9 = vadd.f32 %v223_v7, %v222_v5  ;;  %v229_v10 = vadd.f32 %v228_v8, %v227_v6 }
 0x1ec   :  { %v230_v12 = vrot.slane %v229_v10, 2  ;;  %v225_v13 = vrot.slane %v224_v9, 1 }
 0x1ee   :  { %v231_v14 = vadd.f32 %v230_v12, %v229_v10  ;;  %v226_v16 = vadd.f32 %v225_v13, %v224_v9 }
 0x1f0   :  { %v232_v17 = vrot.slane %v231_v14, 1 }
 0x1f2   :  { %v233_v18 = vadd.f32 %v232_v17, %v231_v14 }
 0x1f4   :  { %v248_v19 = vsel %vm247_vm2, %v233_v18, %v226_v16 }
 0x1f5   :  { %389 = vmatmul.mubr.msk.f32.vlgmr.msra.gmra.mrb[0].mxu1 %vm85_vm0, %v248_v19 }
 0x2c8   :  { %v317_v15 = vpop.f32.mrb[0].mxu1 }
 0x2c9   :  { %v318_v20 = vadd.f32 %v354_v11, %v317_v15  ;;  %v390_v21 = vpop.f32.mrb[1].mxu1 }
 0x2cb   :  { %v321_v23 = vmax.f32 %v318_v20, 0.0 }
 0x2cd   :  { %v329_v24 = vmul.f32 %v356_v22, %v321_v23 }
 0x2cf   :  { %v331_v25 = vsel %vm330_vm3, %v329_v24, 0.0 }
 0x2d0   :  { %332 = vadd.xlane.f32.xlu1 %v331_v25 }
 0x35d   :  { %v333_v27 = vpop.xlane.xlu1 %332 }
 0x35e   :  { %v341_v28 = vadd.f32 %v357_v26, %v333_v27 }
 0x360   :  { %343 = vst.msk [vmem:[%s639_s8] sm:$0x3] %vm342_vm4, %v341_v28 }
 0x361   :  { %348 = vsyncpa [#allocation4], 1 }
 0x362   :  { %349 = vsyncpa [#allocation6], 1 }

</bundles_post_ra>
